<compile_context>
chip_gen: v7x
topology: tpu7x:2x2x1
jax: 0.10.0
libtpu: 0.0.40
codegen_flags: <defaults>
</compile_context>

<pallas_src>
import functools

import jax
import jax.numpy as jnp
from jax import lax
from jax.experimental import pallas as pl
from jax.experimental.pallas import tpu as pltpu


def _round_up(x: int, m: int) -> int:
    return ((x + m - 1) // m) * m


def _vmem_capacity_bytes() -> int:
    """Generation-aware VMEM budget (per TensorCore)."""
    try:
        return int(pltpu.get_tpu_info().vmem_capacity_bytes)
    except Exception:
        return 64 * 1024 * 1024  # conservative default: v7x per-TC VMEM


# ----------------------------------------------------------------------------
# Path A: scalar-prefetch row gather (small batch / big table).
# ----------------------------------------------------------------------------
def _row_gather_kernel(idx_ref, w_ref, out_ref):
    # idx_ref is consumed by the index_maps; the body is a pure tile copy,
    # so the gather is exact for any weight dtype / contents.
    del idx_ref
    out_ref[...] = w_ref[...]


def _gather_path(flat_idx, w2d, k_pad):
    n_shapes = w2d.shape[0]
    b = flat_idx.shape[0]
    itemsize = jnp.dtype(w2d.dtype).itemsize
    # (n_shapes, 1, k_pad): the last two block dims equal the full array dims,
    # so the (8,128) tiling constraint is trivially satisfied.
    w3d = w2d.reshape(n_shapes, 1, k_pad)

    grid_spec = pltpu.PrefetchScalarGridSpec(
        num_scalar_prefetch=1,
        grid=(b,),
        in_specs=[
            # Data-dependent row pick straight out of HBM, one row per step.
            pl.BlockSpec((1, 1, k_pad), lambda i, idx: (idx[i], 0, 0)),
        ],
        out_specs=pl.BlockSpec((1, 1, k_pad), lambda i, idx: (i, 0, 0)),
    )
    # TODO(synk): for large b with a too-large table, batch several rows per
    # grid step via manual make_async_copy DMAs to amortize the ~0.35us/step
    # pipeline overhead.
    packed = pl.pallas_call(
        _row_gather_kernel,
        grid_spec=grid_spec,
        out_shape=jax.ShapeDtypeStruct((b, 1, k_pad), w2d.dtype),
        compiler_params=pltpu.CompilerParams(
            dimension_semantics=("arbitrary",)),
        cost_estimate=pl.CostEstimate(
            flops=0,
            transcendentals=0,
            bytes_accessed=2 * b * k_pad * itemsize + b * 4,
        ),
    )(flat_idx, w3d)
    return packed.reshape(b, k_pad)


# ----------------------------------------------------------------------------
# Path B: VMEM-resident one-hot matmul gather (large batch / small table).
# ----------------------------------------------------------------------------
def _onehot_gather_kernel(idx_ref, w_ref, out_ref, acc_ref, *, chunk,
                          precision):
    # idx_ref: (TB, 1) int32    w_ref: (n_shapes_pad, K_pad) resident in VMEM
    # out_ref: (TB, K_pad)      acc_ref: (TB, K_pad) f32 scratch
    tb = idx_ref.shape[0]
    n_chunks = w_ref.shape[0] // chunk
    idx = idx_ref[...]                                      # (TB, 1)
    acc_ref[...] = jnp.zeros_like(acc_ref)

    def body(c, carry):
        base = pl.multiple_of(c * chunk, chunk)
        lane_ids = lax.broadcasted_iota(jnp.int32, (tb, chunk), 1) + base
        onehot = (idx == lane_ids).astype(w_ref.dtype)      # (TB, chunk)
        # One-hot gather on the MXU, one full-K pass per chunk; f32 weights
        # keep HIGHEST precision so the 0/1 gather is bit-faithful.
        acc_ref[...] += jnp.dot(
            onehot,
            w_ref[pl.ds(base, chunk), :],
            precision=precision,
            preferred_element_type=jnp.float32,
        )
        return carry

    lax.fori_loop(0, n_chunks, body, 0, unroll=(n_chunks <= 8))
    out_ref[...] = acc_ref[...].astype(out_ref.dtype)


def _matmul_path(flat_idx, w2d, k_pad, block_b, vmem_cap):
    n_shapes = w2d.shape[0]
    b = flat_idx.shape[0]
    dtype = w2d.dtype
    itemsize = jnp.dtype(dtype).itemsize

    # Pad the contraction dim to a lane multiple (unmasked compares, full-K
    # MXU passes).  Padded rows are zero and never selected (indices clamped).
    n_shapes_pad = _round_up(n_shapes, 128)
    if n_shapes_pad != n_shapes:
        w2d = jnp.pad(w2d, ((0, n_shapes_pad - n_shapes), (0, 0)))
    chunk = 256 if n_shapes_pad % 256 == 0 else 128
    table_bytes = n_shapes_pad * k_pad * itemsize

    # Batch tile: biggest that fits the VMEM budget next to the resident table.
    tb = block_b if b > block_b else _round_up(max(b, 8), 8)

    def footprint(tb_):
        return (table_bytes                     # single-buffered table
                + 2 * tb_ * k_pad * itemsize    # double-buffered output tiles
                + 2 * tb_ * 4                   # double-buffered idx tiles
                + tb_ * k_pad * 4               # f32 accumulator scratch
                + 4 * tb_ * chunk * 4)          # one-hot / iota temporaries

    while tb > 64 and footprint(tb) > int(0.6 * vmem_cap):
        tb = _round_up(max(64, tb // 2), 8)

    b_pad = _round_up(b, tb)
    if b_pad != b:
        flat_idx = jnp.pad(flat_idx, (0, b_pad - b))  # pad with valid index 0
    idx2d = flat_idx.reshape(b_pad, 1)

    vmem_limit = min(int(0.9 * vmem_cap),
                     max(footprint(tb) + (8 << 20), 32 << 20))
    precision = lax.Precision.HIGHEST if dtype == jnp.float32 else None
    kernel = functools.partial(_onehot_gather_kernel, chunk=chunk,
                               precision=precision)

    packed = pl.pallas_call(
        kernel,
        grid=(b_pad // tb,),
        in_specs=[
            # Per-tile index column (pipelined).
            pl.BlockSpec((tb, 1), lambda i: (i, 0)),
            # Whole weight table resident in VMEM, single-buffered
            # (no pipeline double-buffering of the table).
            pl.BlockSpec(memory_space=pltpu.MemorySpace.VMEM),
        ],
        out_specs=pl.BlockSpec((tb, k_pad), lambda i: (i, 0)),
        out_shape=jax.ShapeDtypeStruct((b_pad, k_pad), dtype),
        scratch_shapes=[pltpu.VMEM((tb, k_pad), jnp.float32)],
        compiler_params=pltpu.CompilerParams(
            dimension_semantics=("parallel",),
            vmem_limit_bytes=vmem_limit,
        ),
        cost_estimate=pl.CostEstimate(
            flops=2 * b_pad * n_shapes_pad * k_pad,
            transcendentals=0,
            bytes_accessed=table_bytes + b_pad * k_pad * itemsize + b_pad * 4,
        ),
    )(idx2d, w2d)
    return packed[:b]


# ----------------------------------------------------------------------------
# Public forward.
# ----------------------------------------------------------------------------
def part_pose_forward(indices, weight, rotation=True, translation=True,
                      scale=True, block_b=1024):
    """Pallas equivalent of PartPose.forward."""
    n_shapes, n_parts, pose_dim = weight.shape
    expected = 4 * int(rotation) + 3 * int(translation) + 3 * int(scale)
    assert pose_dim == expected, (pose_dim, expected)

    orig_shape = indices.shape
    flat_idx = indices.reshape(-1).astype(jnp.int32)
    # NOTE: out-of-range indices are clamped (PyTorch F.embedding would fault).
    flat_idx = jnp.clip(flat_idx, 0, n_shapes - 1)
    b = flat_idx.shape[0]

    # Pack the table to 2D and pad the last dim to a lane-dense multiple of
    # 128 so all kernel stores are unmasked.
    k = n_parts * pose_dim
    k_pad = _round_up(k, 128)
    w2d = weight.reshape(n_shapes, k)
    if k_pad != k:
        w2d = jnp.pad(w2d, ((0, 0), (0, k_pad - k)))

    itemsize = jnp.dtype(w2d.dtype).itemsize
    vmem_cap = _vmem_capacity_bytes()
    table_bytes = _round_up(n_shapes, 128) * k_pad * itemsize
    # One-hot matmul only when it beats a row gather (b >= n_shapes) and the
    # table comfortably fits next to the tiles (<= ~1/3 of per-TC VMEM).
    use_matmul = (b >= n_shapes) and (table_bytes <= vmem_cap // 3)

    if use_matmul:
        packed = _matmul_path(flat_idx, w2d, k_pad, block_b, vmem_cap)
    else:
        packed = _gather_path(flat_idx, w2d, k_pad)

    # Un-pad, reshape, and split rot/trans/scale in the wrapper (kernel output
    # is lane-dense; the slicing here is cheap XLA work).
    emb = packed[:, :k].reshape(orig_shape + (n_parts, pose_dim))
    outputs = []
    offset = 0
    if rotation:
        outputs.append(emb[..., offset:offset + 4]); offset += 4
    if translation:
        outputs.append(emb[..., offset:offset + 3]); offset += 3
    if scale:
        outputs.append(emb[..., offset:offset + 3]); offset += 3
    return outputs if len(outputs) > 1 else outputs[0]


def make_part_pose_weight(n_shapes, n_parts, key, dtype=jnp.float32):
    """Weight init mirroring PartPose.__init__ plus a small perturbation so
    the gather is non-trivial to verify."""
    pose_dim = 4 + 3 + 3
    w = jnp.zeros((n_shapes, n_parts, pose_dim), dtype=dtype)
    w = w.at[..., 0].set(1.0)      # quaternion w component
    w = w.at[..., -3:].set(1.0)    # scale
    noise = 0.01 * jax.random.normal(key, (n_shapes, n_parts, pose_dim),
                                     dtype=dtype)
    return w + noise


def _reference(indices, weight):
    """Pure-JAX reference matching the PyTorch forward."""
    n_shapes, n_parts, pose_dim = weight.shape
    flat_w = weight.reshape(-1, pose_dim)
    idx = indices[..., None] * n_parts + jnp.arange(n_parts)
    emb = flat_w[idx]
    return [emb[..., 0:4], emb[..., 4:7], emb[..., 7:10]]


if __name__ == "__main__":
    key = jax.random.PRNGKey(0)
    k_w, k_idx1, k_idx2 = jax.random.split(key, 3)

    n_shapes, n_parts = 16, 8
    weight = make_part_pose_weight(n_shapes, n_parts, k_w)

    # Small batch (b < n_shapes) -> scalar-prefetch row-gather path.
    idx_small = jax.random.randint(k_idx1, (4,), 0, n_shapes, dtype=jnp.int32)
    outs_small = part_pose_forward(idx_small, weight)

    # Larger 2-D batch (b >= n_shapes) -> VMEM-resident one-hot matmul path.
    idx_big = jax.random.randint(k_idx2, (3, 20), 0, n_shapes, dtype=jnp.int32)
    outs_big = part_pose_forward(idx_big, weight)

    outs_small = jax.block_until_ready(outs_small)
    outs_big = jax.block_until_ready(outs_big)

    for idx, outs in ((idx_small, outs_small), (idx_big, outs_big)):
        refs = _reference(idx, weight)
        assert len(outs) == len(refs)
        for o, r in zip(outs, refs):
            assert o.shape == r.shape, (o.shape, r.shape)
            assert jnp.allclose(o, r, atol=1e-6), "mismatch vs reference"

    print("KERNEL_OK")
</pallas_src>

<mosaic_0001>
module attributes {stable_mosaic.version = 11 : i64} {
  func.func @_row_gather_kernel(%arg0: i32, %arg1: memref<4xi32, #tpu.memory_space<smem>>, %arg2: memref<1x1x128xf32, #tpu.memory_space<vmem>>, %arg3: memref<1x1x128xf32, #tpu.memory_space<vmem>>) attributes {dimension_semantics = [#tpu.dimension_semantics<arbitrary>], iteration_bounds = array<i64: 4>, scalar_prefetch = 1 : i64, scratch_operands = 0 : i64, tpu.core_type = #tpu.core_type<tc>, window_params = [{transform_indices = @transform_0, window_bounds = array<i64: 1, 1, 128>}, {transform_indices = @transform_1, window_bounds = array<i64: 1, 1, 128>}]} {
    %c0 = arith.constant 0 : index
    %c0_0 = arith.constant 0 : index
    %c0_1 = arith.constant 0 : index
    %0 = vector.load %arg2[%c0, %c0_0, %c0_1] : memref<1x1x128xf32, #tpu.memory_space<vmem>>, vector<1x1x128xf32>
    %c0_2 = arith.constant 0 : index
    %c0_3 = arith.constant 0 : index
    %c0_4 = arith.constant 0 : index
    %1 = vector.load %arg3[%c0_2, %c0_3, %c0_4] : memref<1x1x128xf32, #tpu.memory_space<vmem>>, vector<1x1x128xf32>
    tpu.vector_store %arg3[%c0_2, %c0_3, %c0_4], %0 {strides = array<i32>} : memref<1x1x128xf32, #tpu.memory_space<vmem>>, vector<1x1x128xf32>,
    return
  }
  func.func @transform_0(%arg0: i32, %arg1: memref<4xi32, #tpu.memory_space<smem>>) -> (i32, i32, i32) {
    %0 = arith.index_cast %arg0 : i32 to index
    %1 = memref.load %arg1[%0] : memref<4xi32, #tpu.memory_space<smem>>
    %c0_i32 = arith.constant 0 : i32
    %c0_i32_0 = arith.constant 0 : i32
    %c0_i32_1 = arith.constant 0 : i32
    return %1, %c0_i32, %c0_i32_0 : i32, i32, i32
  }
  func.func @transform_1(%arg0: i32, %arg1: memref<4xi32, #tpu.memory_space<smem>>) -> (i32, i32, i32) {
    %c0_i32 = arith.constant 0 : i32
    %c0_i32_0 = arith.constant 0 : i32
    %c0_i32_1 = arith.constant 0 : i32
    return %arg0, %c0_i32, %c0_i32_0 : i32, i32, i32
  }
}

</mosaic_0001>

<bundles_post_ra>
// kernel: tpu_custom_call.1
= control target key start
LH: loop header
LB: loop body
LE: loop exit
PB: predicated region body
PF: predicated region fallthrough
CT: control target
= control target key end

     0   :  { %s654_s0 = inlined_call_operand.hbm [shape: s32[4], index: 0, kind: input, shape index: {}]   ;;  %s655_s1 = inlined_call_operand.hbm [shape: f32[16,1,128], index: 1, kind: input, shape index: {}]   ;;  %s656_s2 = inlined_call_operand.hbm [shape: f32[4,1,128], index: 2, kind: output, shape index: {}]  }
   0x1   :  { %s298_s11 = scalar_lea.hbm %s654_s0, 16 }
   0x2   :  { %p299_p0 = scmp.ne.s32.totalorder %s654_s0, %s298_s11  ;;  %p302_p1 = scmp.lt.u32.totalorder %s298_s11, %s654_s0 }
   0x4   :  { %p304_p2 = pnand %p302_p1, %p299_p0 }
   0x6   :  { %307 = shalt.err (!%p304_p2)  }
   0x7   :  { %s432_s16 = smov [#allocation3]  }
   0x8   :  { %8 = dma.hbm_to_smem %s654_s0, 16, %s432_s16, [#allocation2] }
   0x9   :  { %394 = dma.done.wait [#allocation2], 16 }
   0xa   :  { %395 = vsyncadd [#allocation2], 4294967280 }
   0xb   :  { %10 = sfence }
   0xc   :  { %11 = vsyncpa [#allocation5], 0 }
   0xd   :  { %13 = vsyncpa [#allocation5 + $0x1], 0 }
   0xe   :  { %14 = vsyncpa [#allocation6], 0 }
   0xf   :  { %16 = vsyncpa [#allocation6 + $0x1], 0  ;;  %s462_s19 = smov 0   ;;  %s464_s20 = smov 0  }
  0x10   :  { %s466_s21 = smov 0   ;;  %s468_s22 = smov 0  }
  0x11   :  { %s470_s23 = smov 0   ;;  %s472_s24 = smov 0  }
  0x12   :  { %s474_s0 = smov 0  }
  0x13 LB: > { %s496_s25 = sadd.s32 4294967295, %s430_s0   ;;  %s215_s26 = sadd.s32 4294967294, %s430_s0   ;;  %s430_s0 = sphi %s474_s0, %s674_s0   ;;  %s426_s24 = sphi %s472_s24, %s673_s24   ;;  %s422_s23 = sphi %s470_s23, %s672_s23   ;;  %s418_s22 = sphi %s468_s22, %s671_s22   ;;  %s414_s21 = sphi %s466_s21, %s670_s21   ;;  %s410_s20 = sphi %s464_s20, %s669_s20   ;;  %s406_s19 = sphi %s462_s19, %s668_s19  }
  0x14   : > { %s500_s27 = sadd.s32 1, %s430_s0   ;;  %s26_s28 = sld [smem:[#allocation3 + %s430_s0]] }
  0x15   : > { %s27_s29 = sld [smem:[#allocation3 + %s500_s27]]  ;;  %s31_s30 = sadd.s32 1, %s426_s24 }
  0x16   : > { %p38_p3 = scmp.ne.s32.totalorder %s426_s24, %s422_s23  ;;  %p39_p4 = scmp.eq.s32.totalorder %s430_s0, 0 }
  0x17   : > { %p44_p5 = scmp.ne.s32.totalorder %s422_s23, %s418_s22  ;;  %p45_p6 = scmp.eq.s32.totalorder %s496_s25, 0 }
  0x18   : > { %p510_p7 = por %p39_p4, %p38_p3  ;;  %s54_s4 = ssub.s32 %s430_s0, %s500_s27 }
  0x19   : > { %p516_p8 = por %p45_p6, %p44_p5  ;;  %p55_p9 = scmp.eq.s32.totalorder %s54_s4, 0 }
  0x1a   : > { %s57_s6 = sadd.s32 1, %s414_s21  ;;  %p67_p10 = scmp.ne.s32.totalorder %s414_s21, %s410_s20 }
  0x1b   : > { %s660_s5 = scalar_select %p516_p8, 1, 0 }
  0x1c   : > { %s28_s7 = ssub.s32 %s26_s28, %s27_s29  ;;  %p68_p11 = scmp.eq.s32.totalorder %s496_s25, 3 }
  0x1d   : > { %p29_p12 = scmp.eq.s32.totalorder %s28_s7, 0  ;;  %p73_p13 = scmp.ne.s32.totalorder %s410_s20, %s406_s19 }
  0x1e   : > { %s527_s8 = scalar_select %p55_p9, %s414_s21, %s57_s6  }
  0x1f   : > { %s530_s9 = scalar_select %p29_p12, %s426_s24, %s31_s30  }
  0x20   : > { %p532_p0 = por %p68_p11, %p67_p10  ;;  %p74_p1 = scmp.eq.s32.totalorder %s215_s26, 3 }
  0x21   : > { %p239_p3 = scmp.lt.s32.totalorder %s430_s0, 4  ;;  %s94_s12 = sand.u32 1, %s426_s24  }
  0x22   : > { %s661_s10 = scalar_select %p532_p0, 1, 0 }
  0x23   : > { %p536_p2 = por %p74_p1, %p73_p13  ;;  %p549_p4 = pnand %p239_p3, %p510_p7 }
  0x24   : > { %s223_s13 = scalar_select %p510_p7, [#allocation3], [#allocation8] }
  0x25   : > { %s662_s11 = scalar_select %p536_p2, 1, 0 }
  0x26   : > { %s224_s14 = scalar_select %p510_p7, %s430_s0, 0 }
  0x27   : > { %s676_s13 = smov (!%p239_p3, %s223_s13), [#allocation9]  ;;  %p219_p5 = scmp.ge.s32.totalorder %s430_s0, 1 }
  0x28   : > { %s678_s14 = smov (!%p239_p3, %s224_s14), 0  ;;  %s97_s17 = scalar_lea.vmem [#allocation4], %s94_s12 }
  0x29   : > { %s98_s16 = sld [smem:[%s676_s13 + %s678_s14]]  ;;  %s105_s18 = sshll.u32 %s97_s17, 4  ;;  %s559_s18 = int_to_ptr.vmem [resolvable:$true] %s105_s18 }
  0x2a   : > { %p110_p6 = scmp.lt.s32.totalorder %s430_s0, 5  ;;  %s95_s3 = scalar_lea.sflag [#allocation5], %s94_s12 }
  0x2b   : > { %p310_p10 = pneg %p549_p4  ;;  %s313_s13 = scalar_lea.hbm %s655_s1, 256 }
  0x2c   : > { %p555_p9 = pnand %p219_p5, %p110_p6 }
  0x2f   : > { %s218_s26 = sshll.u32 %s98_s16, 4 }
  0x30   : > { %s564_s30 = scalar_lea.hbm %s655_s1, %s218_s26 }
  0x31   : > { %s308_s4 = scalar_lea.hbm %s564_s30, 16  ;;  %p314_p13 = scmp.lt.u32.totalorder %s564_s30, %s655_s1 }
  0x32   : > { %p309_p7 = scmp.ne.s32.totalorder %s564_s30, %s308_s4  ;;  %p315_p1 = scmp.lt.u32.totalorder %s313_s13, %s308_s4 }
  0x33   : > { %p317_p5 = scmp.lt.u32.totalorder %s308_s4, %s564_s30 }
  0x34   : > { %p311_p11 = pnand %p310_p10, %p309_p7  ;;  %p316_p3 = por %p315_p1, %p314_p13 }
  0x36   : > { %p312_p12 = pneg %p311_p11  ;;  %p318_p6 = por %p317_p5, %p316_p3 }
  0x38   : > { %p319_p2 = pnand %p318_p6, %p312_p12 }
  0x3a   : > { %322 = shalt.err (!%p319_p2)
}
  0x3b   : > { %s323_s12 = scalar_lea.vmem %s559_s18, 16  ;;  %s433_s17 = smov [#allocation4]  }
  0x3c   : > { %p324_p7 = scmp.ne.s32.totalorder %s559_s18, %s323_s12  ;;  %s328_s26 = sshll.u32 %s433_s17, 4  ;;  %s329_s26 = int_to_ptr.vmem [resolvable:$false] %s328_s26 }
  0x3d   : > { %s330_s28 = scalar_lea.vmem %s329_s26, 32  ;;  %p331_p8 = scmp.lt.s32.totalorder %s559_s18, %s329_s26 }
  0x3e   : > { %p326_p11 = pnand %p324_p7, %p310_p10  ;;  %p332_p13 = scmp.lt.s32.totalorder %s330_s28, %s323_s12 }
  0x40   : > { %p327_p0 = pneg %p326_p11  ;;  %p333_p1 = por %p332_p13, %p331_p8 }
  0x42   : > { %p334_p3 = pnand %p333_p1, %p327_p0 }
  0x44   : > { %337 = shalt.err (!%p334_p3)
}
  0x45   : > { %234 = dma.hbm_to_vmem [thread:$0]  (!%p549_p4), %s564_s30, 16, %s559_s18, %s95_s3  }
  0x46   : > { %114 = sbr.rel (%p555_p9) target bundleno = 104 (0x68), region = 24  ;;  %s116_s29 = sand.u32 (!%p555_p9), 1, %s422_s23  }
  0x47   : > { %s117_s4 = scalar_lea.sflag (!%p555_p9), [#allocation5], %s116_s29  ;;  %s119_s6 = scalar_lea.vmem (!%p555_p9), [#allocation4], %s116_s29 }
  0x48   : > { %p665_p2 = scmp.ne.s32.totalorder (!%p555_p9), %s660_s5, 0 }
  0x4d   : > { %397 = dma.done.wait (%p665_p2), %s117_s4, 16  }
  0x4e   : > { %399 = vsyncadd (%p665_p2), %s117_s4, 4294967280  ;;  %s134_s15 = sand.u32 1, %s410_s20   ;;  %s220_s18 = sshll.u32 %s496_s25, 4  ;;  %v137_v0 = vld [vmem:[%s119_s6] sm:$0x1] }
  0x4f   : > { %s135_s7 = scalar_lea.vmem [#allocation7], %s134_s15  ;;  %s605_s3 = scalar_lea.hbm %s656_s2, %s220_s18 }
  0x50   : > { %s152_s13 = sshll.u32 %s135_s7, 4  ;;  %138 = vst [vmem:[%s135_s7] sm:$0x1] %v137_v0  ;;  %s140_s5 = scalar_lea.sflag [#allocation6], %s134_s15  ;;  %s600_s13 = int_to_ptr.vmem [resolvable:$true] %s152_s13 }
  0x51   : > { %s338_s14 = scalar_lea.vmem %s600_s13, 16  ;;  %p666_p0 = scmp.ne.s32.totalorder %s661_s10, 0 }
  0x52   : > { %p339_p8 = scmp.ne.s32.totalorder %s600_s13, %s338_s14  ;;  %s434_s16 = smov [#allocation7]  }
  0x53   : > { %s342_s25 = sshll.u32 %s434_s16, 4  ;;  %s343_s25 = int_to_ptr.vmem [resolvable:$false] %s342_s25 }
  0x54   : > { %p340_p4 = pnand %p339_p8, %p666_p0  ;;  %s344_s12 = scalar_lea.vmem %s343_s25, 32 }
  0x55   : > { %p345_p10 = scmp.lt.s32.totalorder %s600_s13, %s343_s25  ;;  %p346_p12 = scmp.lt.s32.totalorder %s344_s12, %s338_s14 }
  0x56   : > { %p341_p9 = pneg %p340_p4 }
  0x57   : > { %p347_p5 = por %p346_p12, %p345_p10 }
  0x59   : > { %p348_p6 = pnand %p347_p5, %p341_p9 }
  0x5b   : > { %351 = shalt.err (!%p348_p6)
}
  0x5c   : > { %s352_s17 = scalar_lea.hbm %s605_s3, 16  ;;  %s356_s29 = scalar_lea.hbm %s656_s2, 64 }
  0x5d   : > { %p353_p7 = scmp.ne.s32.totalorder %s605_s3, %s352_s17  ;;  %p357_p1 = scmp.lt.u32.totalorder %s605_s3, %s656_s2 }
  0x5e   : > { %p358_p3 = scmp.lt.u32.totalorder %s356_s29, %s352_s17  ;;  %p360_p8 = scmp.lt.u32.totalorder %s352_s17, %s605_s3 }
  0x5f   : > { %p354_p11 = pnand %p353_p7, %p666_p0 }
  0x60   : > { %p359_p2 = por %p358_p3, %p357_p1 }
  0x61   : > { %p355_p13 = pneg %p354_p11 }
  0x62   : > { %p361_p4 = por %p360_p8, %p359_p2 }
  0x64   : > { %p362_p9 = pnand %p361_p4, %p355_p13 }
  0x66   : > { %365 = shalt.err (!%p362_p9)
}
  0x67   : > { %227 = dma.vmem_to_hbm [thread:$0]  (%p666_p0), %s600_s13, 16, %s605_s3, %s140_s5  }
  0x68 PF: > { %p240_p10 = scmp.ge.s32.totalorder %s430_s0, 2  ;;  %s164_s15 = sand.u32 1, %s406_s19  }
  0x69   : > { %p667_p12 = scmp.ne.s32.totalorder %s662_s11, 0  ;;  %s165_s7 = scalar_lea.sflag [#allocation6], %s164_s15 }
  0x6b   : > { %p236_p5 = pnand %p240_p10, %p667_p12 }
  0x6d   : > { %401 = dma.done.wait (!%p236_p5), %s165_s7, 16  }
  0x6e   : > { %403 = vsyncadd (!%p236_p5), %s165_s7, 4294967280  ;;  %p19_p0 = scmp.ge.s32.totalorder %s500_s27, 6   ;;  %s668_s19 = smov %s410_s20 }
  0x6f   : > { %s669_s20 = smov %s414_s21  ;;  %s670_s21 = smov %s527_s8 }
  0x70   : > { %s671_s22 = smov %s422_s23  ;;  %s672_s23 = smov %s426_s24 }
  0x71   : > { %s673_s24 = smov %s530_s9  ;;  %s674_s0 = smov %s500_s27 }
  0x72   :  { %21 = sbr.rel (!%p19_p0) target bundleno = 19 (0x13), region = 69 }
  0x79   :  { %169 = vsyncpa [#allocation5], 1 }
  0x7a   :  { %171 = vsyncpa [#allocation5 + $0x1], 1 }
  0x7b   :  { %172 = vsyncpa [#allocation6], 1 }
  0x7c   :  { %174 = vsyncpa [#allocation6 + $0x1], 1 }

</bundles_post_ra>
